<compile_context>
chip_gen: v5e
topology: v5e:2x2
jax: 0.10.0
libtpu: 0.0.40
codegen_flags: <defaults>
</compile_context>

<pallas_src>
import functools

import jax
import jax.numpy as jnp
import numpy as np
from jax import lax
from jax.experimental import pallas as pl
from jax.experimental.pallas import tpu as pltpu

# ---- small, shape-consistent problem sizes -------------------------------
B, CIN, H, W = 2, 4, 16, 16
HIDDEN = 32
COUT = 4
K = 3                      # 3x3 convs, pad=1, stride=1
NTAP = K * K
TAP = 8                    # per-tap row stride in the packed decoder weight (tile-aligned)
K_ENC_PAD = 48             # 9*CIN + 1 (ones row carrying b_enc), padded to a multiple of 16
HID_PAD = 48               # HIDDEN + 1 (ones row carrying b_dec), padded to a multiple of 16


def _encdec_kernel(hidden, cout, ksz, h, w,
                   xcolT_ref, wencT_ref, wdecT_ref, mask_ref, lat_ref, out_ref):
    """One grid step == one batch image; everything lane-dense (HW = 256 lanes).

    xcolT_ref : (K_ENC_PAD, HW)   bf16  transposed im2col + ones row (+ zero pad rows)
    wencT_ref : (HID_PAD, K_ENC_PAD) bf16  encoder weights^T, bias column folded in
    wdecT_ref : (NTAP*8, HID_PAD) bf16  decoder weights^T, 8-row slab per tap, b_dec in center tap
    mask_ref  : (NTAP*8, HW)      f32   static source-side boundary masks (0/1)
    lat_ref   : (1, HIDDEN, HW)   f32   latent block for this batch image
    out_ref   : (1, COUT,   HW)   f32   output block for this batch image
    """
    hw = h * w
    ntap = ksz * ksz
    center = ntap // 2

    # ---------------- Encoder: ONE lane-dense matmul (bias folded) --------------
    enc = jnp.dot(wencT_ref[...], xcolT_ref[...],
                  preferred_element_type=jnp.float32)          # (HID_PAD, HW) f32
    enc = jnp.maximum(enc, 0.0)                                # ReLU; the ones row stays 1.0
    lat_ref[0, :, :] = enc[:hidden, :]                         # lane-dense store, no transpose

    # ---------------- Decoder: ONE matmul against all 9 taps --------------------
    p = jnp.dot(wdecT_ref[...], enc.astype(jnp.bfloat16),
                preferred_element_type=jnp.float32)            # (NTAP*8, HW) f32

    # Center tap: no shift, always valid; carries the folded decoder bias.
    acc = p[center * TAP:center * TAP + TAP, :]                # (8, HW), aligned slab
    for t in range(ntap):
        if t == center:
            continue
        dy, dx = divmod(t, ksz)
        s = (dy - 1) * w + (dx - 1)                            # output -> source flat-pixel shift
        slab = p[t * TAP:t * TAP + TAP, :] * mask_ref[t * TAP:t * TAP + TAP, :]
        acc = acc + pltpu.roll(slab, (-s) % hw, axis=1)        # small lane rotate (XLU slot)

    out_ref[0, :, :] = acc[:cout, :]


def encoder_decoder_forward(x_nchw, w_enc, b_enc, w_dec, b_dec):
    """Forward pass. x_nchw: (B, CIN, H, W) float32 (PyTorch convention).

    Returns (latent, output) in NCHW:
      latent: (B, HIDDEN, H, W)   -- latent_features()
      output: (B, COUT,   H, W)   -- forward()
    """
    b, cin, h, w = x_nchw.shape
    kh, kw, _, hidden = w_enc.shape
    cout = w_dec.shape[3]
    ntap = kh * kw
    hw = h * w
    bhw = b * hw
    center = ntap // 2
    f32, bf16 = jnp.float32, jnp.bfloat16

    # --- transposed im2col: rows = tap*CIN + c, cols = b*HW + y*W + x; ones row folds b_enc ---
    # TODO(synk): optionally move the im2col into the kernel (9 lane rolls on a (CIN,HW) tile).
    xp = jnp.pad(x_nchw, ((0, 0), (0, 0), (1, 1), (1, 1)))
    patches = jnp.stack([xp[:, :, dy:dy + h, dx:dx + w]
                         for dy in range(kh) for dx in range(kw)], axis=0)       # (9, B, CIN, H, W)
    xcolT = patches.transpose(0, 2, 1, 3, 4).reshape(ntap * cin, bhw)
    xcolT_aug = jnp.concatenate(
        [xcolT, jnp.ones((1, bhw), f32),
         jnp.zeros((K_ENC_PAD - ntap * cin - 1, bhw), f32)], axis=0).astype(bf16)  # (48, BHW)

    # --- encoder weights^T with bias column and the constant-one latent row -------------------
    wencT = w_enc.reshape(ntap * cin, hidden).T                                    # (32, 36)
    wencT_aug = jnp.zeros((HID_PAD, K_ENC_PAD), f32)
    wencT_aug = wencT_aug.at[:hidden, :ntap * cin].set(wencT)
    wencT_aug = wencT_aug.at[:hidden, ntap * cin].set(b_enc.reshape(hidden))
    wencT_aug = wencT_aug.at[hidden, ntap * cin].set(1.0)                          # latent row 32 == 1
    wencT_aug = wencT_aug.astype(bf16)                                             # (48, 48)

    # --- decoder weights^T, tap-major, 8-row aligned slab per tap; b_dec folded in center tap --
    wdec_t = jnp.transpose(w_dec, (0, 1, 3, 2)).reshape(ntap, cout, hidden)        # [t, o, h]
    wdecT_all = jnp.zeros((ntap * TAP, HID_PAD), f32)
    for t in range(ntap):
        wdecT_all = wdecT_all.at[t * TAP:t * TAP + cout, :hidden].set(wdec_t[t])
    wdecT_all = wdecT_all.at[center * TAP:center * TAP + cout, hidden].set(b_dec.reshape(cout))
    wdecT_all = wdecT_all.astype(bf16)                                             # (72, 48)

    # --- static source-side boundary masks (zero-padding semantics), pre-broadcast to slabs ----
    ys, xs = np.divmod(np.arange(hw), w)
    mask_np = np.zeros((ntap * TAP, hw), np.float32)
    for t in range(ntap):
        dy, dx = divmod(t, kw)
        oy, ox = ys - (dy - 1), xs - (dx - 1)          # output pixel this source value lands on
        mask_np[t * TAP:t * TAP + TAP, :] = ((oy >= 0) & (oy < h) & (ox >= 0) & (ox < w))
    mask = jnp.asarray(mask_np)                                                    # (72, HW)

    kernel = functools.partial(_encdec_kernel, hidden, cout, kh, h, w)

    lat_blk, out_blk = pl.pallas_call(
        kernel,
        out_shape=(
            jax.ShapeDtypeStruct((b, hidden, hw), f32),
            jax.ShapeDtypeStruct((b, cout, hw), f32),
        ),
        grid=(b,),                                               # one step per batch image
        in_specs=[
            pl.BlockSpec((K_ENC_PAD, hw), lambda i: (0, i)),     # per-batch 256-lane column block
            pl.BlockSpec((HID_PAD, K_ENC_PAD), lambda i: (0, 0)),
            pl.BlockSpec((ntap * TAP, HID_PAD), lambda i: (0, 0)),
            pl.BlockSpec((ntap * TAP, hw), lambda i: (0, 0)),
        ],
        out_specs=(
            pl.BlockSpec((1, hidden, hw), lambda i: (i, 0, 0)),
            pl.BlockSpec((1, cout, hw), lambda i: (i, 0, 0)),
        ),
        compiler_params=pltpu.CompilerParams(
            dimension_semantics=("parallel",)),                  # 2 TCs on v7x; harmless on v5e/v6e
    )(xcolT_aug, wencT_aug, wdecT_all, mask)

    latent = lat_blk.reshape(b, hidden, h, w)                    # free reshape to NCHW (no transpose)
    output = out_blk.reshape(b, cout, h, w)
    return latent, output


def _reference(x_nchw, w_enc, b_enc, w_dec, b_dec):
    """Plain-JAX reference mirroring the kernel's bf16-operand / f32-accumulate precision."""
    f32, bf16 = jnp.float32, jnp.bfloat16
    xb = x_nchw.astype(bf16).astype(f32)
    web = w_enc.astype(bf16).astype(f32)
    wdb = w_dec.astype(bf16).astype(f32)
    beb = b_enc.astype(bf16).astype(f32)     # biases ride the MXU as bf16 operands in the kernel
    bdb = b_dec.astype(bf16).astype(f32)

    xn = jnp.transpose(xb, (0, 2, 3, 1))
    dn = ("NHWC", "HWIO", "NHWC")
    enc = lax.conv_general_dilated(xn, web, (1, 1), "SAME", dimension_numbers=dn,
                                   precision=lax.Precision.HIGHEST) + beb[0]
    enc = jnp.maximum(enc, 0.0)
    encb = enc.astype(bf16).astype(f32)      # kernel feeds a bf16 latent to the decoder MXU
    out = lax.conv_general_dilated(encb, wdb, (1, 1), "SAME", dimension_numbers=dn,
                                   precision=lax.Precision.HIGHEST) + bdb[0]
    return (jnp.transpose(enc, (0, 3, 1, 2)), jnp.transpose(out, (0, 3, 1, 2)))


if __name__ == "__main__":
    key = jax.random.PRNGKey(0)
    k_x, k_we, k_be, k_wd, k_bd = jax.random.split(key, 5)

    # deterministic synthetic parameters (no checkpoint loading)
    x = jax.random.normal(k_x, (B, CIN, H, W), dtype=jnp.float32)
    w_enc = 0.1 * jax.random.normal(k_we, (K, K, CIN, HIDDEN), dtype=jnp.float32)
    b_enc = 0.1 * jax.random.normal(k_be, (1, HIDDEN), dtype=jnp.float32)
    w_dec = 0.1 * jax.random.normal(k_wd, (K, K, HIDDEN, COUT), dtype=jnp.float32)
    b_dec = 0.1 * jax.random.normal(k_bd, (1, COUT), dtype=jnp.float32)

    fwd = jax.jit(encoder_decoder_forward)
    latent, output = fwd(x, w_enc, b_enc, w_dec, b_dec)
    jax.block_until_ready((latent, output))

    lat_ref, out_ref = _reference(x, w_enc, b_enc, w_dec, b_dec)
    np.testing.assert_allclose(np.asarray(latent), np.asarray(lat_ref),
                               rtol=2e-3, atol=2e-3)
    np.testing.assert_allclose(np.asarray(output), np.asarray(out_ref),
                               rtol=2e-3, atol=2e-3)

    print("KERNEL_OK")
</pallas_src>

<mosaic_0001>
module attributes {stable_mosaic.version = 11 : i64} {
  func.func @_encdec_kernel(%arg0: i32, %arg1: memref<48x256xbf16, #tpu.memory_space<vmem>>, %arg2: memref<48x48xbf16, #tpu.memory_space<vmem>>, %arg3: memref<72x48xbf16, #tpu.memory_space<vmem>>, %arg4: memref<72x256xf32, #tpu.memory_space<vmem>>, %arg5: memref<1x32x256xf32, #tpu.memory_space<vmem>>, %arg6: memref<1x4x256xf32, #tpu.memory_space<vmem>>) attributes {dimension_semantics = [#tpu.dimension_semantics<parallel>], iteration_bounds = array<i64: 2>, scalar_prefetch = 0 : i64, scratch_operands = 0 : i64, tpu.core_type = #tpu.core_type<tc>, window_params = [{transform_indices = @transform_0, window_bounds = array<i64: 48, 256>}, {pipeline_mode = #tpu.pipeline_mode<synchronous>, transform_indices = @transform_1, window_bounds = array<i64: 48, 48>}, {pipeline_mode = #tpu.pipeline_mode<synchronous>, transform_indices = @transform_2, window_bounds = array<i64: 72, 48>}, {pipeline_mode = #tpu.pipeline_mode<synchronous>, transform_indices = @transform_3, window_bounds = array<i64: 72, 256>}, {transform_indices = @transform_4, window_bounds = array<i64: 1, 32, 256>}, {transform_indices = @transform_5, window_bounds = array<i64: 1, 4, 256>}]} {
    %c0 = arith.constant 0 : index
    %c0_0 = arith.constant 0 : index
    %0 = vector.load %arg2[%c0, %c0_0] : memref<48x48xbf16, #tpu.memory_space<vmem>>, vector<48x48xbf16>
    %c0_1 = arith.constant 0 : index
    %c0_2 = arith.constant 0 : index
    %1 = vector.load %arg1[%c0_1, %c0_2] : memref<48x256xbf16, #tpu.memory_space<vmem>>, vector<48x256xbf16>
    %cst = arith.constant dense<0.000000e+00> : vector<48x256xf32>
    %2 = tpu.matmul %0, %1, %cst {dimension_numbers = #tpu.dot_dimension_numbers<[1], [0], [0], [1], [0, 0, 1, 1], [], []>} : vector<48x48xbf16>, vector<48x256xbf16>, vector<48x256xf32> -> vector<48x256xf32>
    %cst_3 = arith.constant 0.000000e+00 : f32
    %3 = vector.broadcast %cst_3 : f32 to vector<48x256xf32>
    %4 = arith.maximumf %2, %3 : vector<48x256xf32>
    %5 = vector.extract_strided_slice %4 {offsets = [0, 0], sizes = [32, 256], strides = [1, 1]} : vector<48x256xf32> to vector<32x256xf32>
    %c0_4 = arith.constant 0 : index
    %c0_5 = arith.constant 0 : index
    %c0_6 = arith.constant 0 : index
    %6 = vector.load %arg5[%c0_4, %c0_5, %c0_6] : memref<1x32x256xf32, #tpu.memory_space<vmem>>, vector<1x32x256xf32>
    %7 = vector.shape_cast %6 : vector<1x32x256xf32> to vector<32x256xf32>
    %8 = vector.shape_cast %5 : vector<32x256xf32> to vector<1x32x256xf32>
    tpu.vector_store %arg5[%c0_4, %c0_5, %c0_6], %8 {strides = array<i32>} : memref<1x32x256xf32, #tpu.memory_space<vmem>>, vector<1x32x256xf32>,
    %c0_7 = arith.constant 0 : index
    %c0_8 = arith.constant 0 : index
    %9 = vector.load %arg3[%c0_7, %c0_8] : memref<72x48xbf16, #tpu.memory_space<vmem>>, vector<72x48xbf16>
    %10 = arith.truncf %4 : vector<48x256xf32> to vector<48x256xbf16>
    %cst_9 = arith.constant dense<0.000000e+00> : vector<72x256xf32>
    %11 = tpu.matmul %9, %10, %cst_9 {dimension_numbers = #tpu.dot_dimension_numbers<[1], [0], [0], [1], [0, 0, 1, 1], [], []>} : vector<72x48xbf16>, vector<48x256xbf16>, vector<72x256xf32> -> vector<72x256xf32>
    %12 = vector.extract_strided_slice %11 {offsets = [32, 0], sizes = [8, 256], strides = [1, 1]} : vector<72x256xf32> to vector<8x256xf32>
    %13 = vector.extract_strided_slice %11 {offsets = [0, 0], sizes = [8, 256], strides = [1, 1]} : vector<72x256xf32> to vector<8x256xf32>
    %c0_10 = arith.constant 0 : index
    %c0_11 = arith.constant 0 : index
    %14 = vector.load %arg4[%c0_10, %c0_11] : memref<72x256xf32, #tpu.memory_space<vmem>>, vector<8x256xf32>
    %15 = arith.mulf %13, %14 : vector<8x256xf32>
    %c17_i32 = arith.constant 17 : i32
    %16 = tpu.dynamic_rotate %15 by %c17_i32 dim 1 : vector<8x256xf32>, i32 -> vector<8x256xf32>
    %17 = arith.addf %12, %16 : vector<8x256xf32>
    %18 = vector.extract_strided_slice %11 {offsets = [8, 0], sizes = [8, 256], strides = [1, 1]} : vector<72x256xf32> to vector<8x256xf32>
    %c8 = arith.constant 8 : index
    %c0_12 = arith.constant 0 : index
    %19 = vector.load %arg4[%c8, %c0_12] : memref<72x256xf32, #tpu.memory_space<vmem>>, vector<8x256xf32>
    %20 = arith.mulf %18, %19 : vector<8x256xf32>
    %c16_i32 = arith.constant 16 : i32
    %21 = tpu.dynamic_rotate %20 by %c16_i32 dim 1 : vector<8x256xf32>, i32 -> vector<8x256xf32>
    %22 = arith.addf %17, %21 : vector<8x256xf32>
    %23 = vector.extract_strided_slice %11 {offsets = [16, 0], sizes = [8, 256], strides = [1, 1]} : vector<72x256xf32> to vector<8x256xf32>
    %c16 = arith.constant 16 : index
    %c0_13 = arith.constant 0 : index
    %24 = vector.load %arg4[%c16, %c0_13] : memref<72x256xf32, #tpu.memory_space<vmem>>, vector<8x256xf32>
    %25 = arith.mulf %23, %24 : vector<8x256xf32>
    %c15_i32 = arith.constant 15 : i32
    %26 = tpu.dynamic_rotate %25 by %c15_i32 dim 1 : vector<8x256xf32>, i32 -> vector<8x256xf32>
    %27 = arith.addf %22, %26 : vector<8x256xf32>
    %28 = vector.extract_strided_slice %11 {offsets = [24, 0], sizes = [8, 256], strides = [1, 1]} : vector<72x256xf32> to vector<8x256xf32>
    %c24 = arith.constant 24 : index
    %c0_14 = arith.constant 0 : index
    %29 = vector.load %arg4[%c24, %c0_14] : memref<72x256xf32, #tpu.memory_space<vmem>>, vector<8x256xf32>
    %30 = arith.mulf %28, %29 : vector<8x256xf32>
    %c1_i32 = arith.constant 1 : i32
    %31 = tpu.dynamic_rotate %30 by %c1_i32 dim 1 : vector<8x256xf32>, i32 -> vector<8x256xf32>
    %32 = arith.addf %27, %31 : vector<8x256xf32>
    %33 = vector.extract_strided_slice %11 {offsets = [40, 0], sizes = [8, 256], strides = [1, 1]} : vector<72x256xf32> to vector<8x256xf32>
    %c40 = arith.constant 40 : index
    %c0_15 = arith.constant 0 : index
    %34 = vector.load %arg4[%c40, %c0_15] : memref<72x256xf32, #tpu.memory_space<vmem>>, vector<8x256xf32>
    %35 = arith.mulf %33, %34 : vector<8x256xf32>
    %c255_i32 = arith.constant 255 : i32
    %36 = tpu.dynamic_rotate %35 by %c255_i32 dim 1 : vector<8x256xf32>, i32 -> vector<8x256xf32>
    %37 = arith.addf %32, %36 : vector<8x256xf32>
    %38 = vector.extract_strided_slice %11 {offsets = [48, 0], sizes = [8, 256], strides = [1, 1]} : vector<72x256xf32> to vector<8x256xf32>
    %c48 = arith.constant 48 : index
    %c0_16 = arith.constant 0 : index
    %39 = vector.load %arg4[%c48, %c0_16] : memref<72x256xf32, #tpu.memory_space<vmem>>, vector<8x256xf32>
    %40 = arith.mulf %38, %39 : vector<8x256xf32>
    %c241_i32 = arith.constant 241 : i32
    %41 = tpu.dynamic_rotate %40 by %c241_i32 dim 1 : vector<8x256xf32>, i32 -> vector<8x256xf32>
    %42 = arith.addf %37, %41 : vector<8x256xf32>
    %43 = vector.extract_strided_slice %11 {offsets = [56, 0], sizes = [8, 256], strides = [1, 1]} : vector<72x256xf32> to vector<8x256xf32>
    %c56 = arith.constant 56 : index
    %c0_17 = arith.constant 0 : index
    %44 = vector.load %arg4[%c56, %c0_17] : memref<72x256xf32, #tpu.memory_space<vmem>>, vector<8x256xf32>
    %45 = arith.mulf %43, %44 : vector<8x256xf32>
    %c240_i32 = arith.constant 240 : i32
    %46 = tpu.dynamic_rotate %45 by %c240_i32 dim 1 : vector<8x256xf32>, i32 -> vector<8x256xf32>
    %47 = arith.addf %42, %46 : vector<8x256xf32>
    %48 = vector.extract_strided_slice %11 {offsets = [64, 0], sizes = [8, 256], strides = [1, 1]} : vector<72x256xf32> to vector<8x256xf32>
    %c64 = arith.constant 64 : index
    %c0_18 = arith.constant 0 : index
    %49 = vector.load %arg4[%c64, %c0_18] : memref<72x256xf32, #tpu.memory_space<vmem>>, vector<8x256xf32>
    %50 = arith.mulf %48, %49 : vector<8x256xf32>
    %c239_i32 = arith.constant 239 : i32
    %51 = tpu.dynamic_rotate %50 by %c239_i32 dim 1 : vector<8x256xf32>, i32 -> vector<8x256xf32>
    %52 = arith.addf %47, %51 : vector<8x256xf32>
    %53 = vector.extract_strided_slice %52 {offsets = [0, 0], sizes = [4, 256], strides = [1, 1]} : vector<8x256xf32> to vector<4x256xf32>
    %c0_19 = arith.constant 0 : index
    %c0_20 = arith.constant 0 : index
    %c0_21 = arith.constant 0 : index
    %54 = vector.load %arg6[%c0_19, %c0_20, %c0_21] : memref<1x4x256xf32, #tpu.memory_space<vmem>>, vector<1x4x256xf32>
    %55 = vector.shape_cast %54 : vector<1x4x256xf32> to vector<4x256xf32>
    %56 = vector.shape_cast %53 : vector<4x256xf32> to vector<1x4x256xf32>
    tpu.vector_store %arg6[%c0_19, %c0_20, %c0_21], %56 {strides = array<i32>} : memref<1x4x256xf32, #tpu.memory_space<vmem>>, vector<1x4x256xf32>,
    return
  }
  func.func @transform_0(%arg0: i32) -> (i32, i32) {
    %c0_i32 = arith.constant 0 : i32
    %c0_i32_0 = arith.constant 0 : i32
    return %c0_i32, %arg0 : i32, i32
  }
  func.func @transform_1(%arg0: i32) -> (i32, i32) {
    %c0_i32 = arith.constant 0 : i32
    %c0_i32_0 = arith.constant 0 : i32
    %c0_i32_1 = arith.constant 0 : i32
    return %c0_i32, %c0_i32_0 : i32, i32
  }
  func.func @transform_2(%arg0: i32) -> (i32, i32) {
    %c0_i32 = arith.constant 0 : i32
    %c0_i32_0 = arith.constant 0 : i32
    %c0_i32_1 = arith.constant 0 : i32
    return %c0_i32, %c0_i32_0 : i32, i32
  }
  func.func @transform_3(%arg0: i32) -> (i32, i32) {
    %c0_i32 = arith.constant 0 : i32
    %c0_i32_0 = arith.constant 0 : i32
    %c0_i32_1 = arith.constant 0 : i32
    return %c0_i32, %c0_i32_0 : i32, i32
  }
  func.func @transform_4(%arg0: i32) -> (i32, i32, i32) {
    %c0_i32 = arith.constant 0 : i32
    %c0_i32_0 = arith.constant 0 : i32
    %c0_i32_1 = arith.constant 0 : i32
    return %arg0, %c0_i32, %c0_i32_0 : i32, i32, i32
  }
  func.func @transform_5(%arg0: i32) -> (i32, i32, i32) {
    %c0_i32 = arith.constant 0 : i32
    %c0_i32_0 = arith.constant 0 : i32
    %c0_i32_1 = arith.constant 0 : i32
    return %arg0, %c0_i32, %c0_i32_0 : i32, i32, i32
  }
}

</mosaic_0001>

<bundles_post_ra>
// kernel: encoder_decoder_forward.1
= control target key start
LH: loop header
LB: loop body
LE: loop exit
PB: predicated region body
PF: predicated region fallthrough
CT: control target
= control target key end

     0   :  { %s956_s18 = smov 0   ;;  %s958_s19 = smov 0   ;;  %s1108_s0 = inlined_call_operand.vmem [shape: bf16[48,512], index: 0, kind: input, shape index: {}]   ;;  %s1109_s1 = inlined_call_operand.vmem [shape: bf16[48,48], index: 1, kind: input, shape index: {}]   ;;  %s1110_s2 = inlined_call_operand.vmem [shape: bf16[72,48], index: 2, kind: input, shape index: {}]   ;;  %s1111_s3 = inlined_call_operand.vmem [shape: f32[72,256], index: 3, kind: input, shape index: {}]   ;;  %s1112_s4 = inlined_call_operand.vmem [shape: f32[2,32,256], index: 4, kind: output, shape index: {0}]   ;;  %s1113_s5 = inlined_call_operand.vmem [shape: f32[2,4,256], index: 5, kind: output, shape index: {1}]  }
   0x1   :  { %s960_s20 = smov 0  }
   0x2 LB: > { %s757_s21 = sadd.s32 4294967295, %s916_s20   ;;  %s973_s22 = sadd.s32 1, %s916_s20   ;;  %s916_s20 = sphi %s960_s20, %s1116_s20   ;;  %s912_s19 = sphi %s958_s19, %s1115_s19   ;;  %s908_s18 = sphi %s956_s18, %s1114_s18  }
   0x3   : > { %s20_s23 = ssub.s32 %s916_s20, %s973_s22  ;;  %s23_s24 = sadd.s32 1, %s912_s19 }
   0x4   : > { %p21_p0 = scmp.eq.s32.totalorder %s20_s23, 0  ;;  %p30_p1 = scmp.ne.s32.totalorder %s912_s19, %s908_s18 }
   0x5   : > { %p31_p2 = scmp.eq.s32.totalorder %s916_s20, 0  ;;  %p760_p4 = scmp.ge.s32.totalorder %s916_s20, 2 }
   0x6   : > { %s982_s25 = scalar_select %p21_p0, %s912_s19, %s23_s24  }
   0x7   : > { %p32_p3 = por %p31_p2, %p30_p1  ;;  %180 = sbr.rel (%p760_p4) target bundleno = 22 (0x16), region = 28 }
   0xc   : > { %183 = sbr.rel (!%p32_p3) target bundleno = 22 (0x16), region = 32  ;;  %s185_s26 = sand.u32 (%p32_p3), 1, %s912_s19  }
   0xd   : > { %s838_s27 = sshll.u32 (%p32_p3), %s916_s20, 3  ;;  %s860_s28 = smul.u32 (%p32_p3), 48, %s185_s26 }
   0xe   : > { %s190_s6 = scalar_lea.vmem (%p32_p3), %s1108_s0, %s838_s27 }
   0xf   : > { %v229_v0 = vld [vmem:[%s190_s6] sm:$0xff] (%p32_p3)  ;;  %v231_v1 = vld [vmem:[%s190_s6 + $0x10] sm:$0xff] (%p32_p3)  ;;  %s187_s7 = scalar_lea.vmem (%p32_p3), [#allocation2], %s860_s28 }
  0x10   : > { %v233_v2 = vld [vmem:[%s190_s6 + $0x20] sm:$0xff] (%p32_p3)  ;;  %230 = vst [vmem:[%s187_s7] sm:$0xff] (%p32_p3), %v229_v0  ;;  %v235_v3 = vld [vmem:[%s190_s6 + $0x30] sm:$0xff] (%p32_p3) }
  0x11   : > { %232 = vst [vmem:[%s187_s7 + $0x8] sm:$0xff] %v231_v1  ;;  %v237_v4 = vld [vmem:[%s190_s6 + $0x40] sm:$0xff]  ;;  %v239_v5 = vld [vmem:[%s190_s6 + $0x50] sm:$0xff] }
  0x12   : > { %234 = vst [vmem:[%s187_s7 + $0x10] sm:$0xff] %v233_v2 }
  0x13   : > { %236 = vst [vmem:[%s187_s7 + $0x18] sm:$0xff] %v235_v3 }
  0x14   : > { %238 = vst [vmem:[%s187_s7 + $0x20] sm:$0xff] %v237_v4 }
  0x15   : > { %240 = vst [vmem:[%s187_s7 + $0x28] sm:$0xff] %v239_v5 }
  0x16 PF: > { %p763_p5 = scmp.ge.s32.totalorder %s916_s20, 1  ;;  %p245_p6 = scmp.lt.s32.totalorder %s916_s20, 3 }
  0x18   : > { %p246_p7 = pnand %p763_p5, %p245_p6 }
  0x19   : > { %s252_s8 = sand.u32 (!%p246_p7), 1, %s908_s18   ;;  %p285_p8 = scmp.lt.s32.totalorder (!%p246_p7), %s757_s21, 1 }
  0x1a   : > { %249 = sbr.rel (%p246_p7) target bundleno = 531 (0x213), region = 70  ;;  %s918_s12 = smov (!%p246_p7), 17  }
  0x1b   : > { %s861_s9 = smul.u32 (!%p246_p7), 48, %s252_s8  ;;  %s919_s23 = smov (!%p246_p7), 15  }
  0x1c   : > { %s921_s6 = smov (!%p246_p7), 1   ;;  %s922_s13 = smov (!%p246_p7), 127  }
  0x1d   : > { %s254_s10 = scalar_lea.vmem (!%p246_p7), [#allocation2], %s861_s9  ;;  %s923_s18 = smov (!%p246_p7), 113  }
  0x1e   : > { %s924_s27 = smov (!%p246_p7), 112   ;;  %s925_s7 = smov (!%p246_p7), 111  }
  0x1f   : > { %v798_v6 = vld [vmem:[%s254_s10 + $0x20] sm:$0xf]  ;;  %v849_v7 = vld [vmem:[%s254_s10 + $0x24] sm:$0xf0]  ;;  %v848_v8 = vld [vmem:[%s254_s10 + $0x24] sm:$0xf] }
  0x20   : > { %v799_v9 = vor.u32 %v849_v7, %v798_v6  ;;  %v800_v10 = vld [vmem:[%s254_s10 + $0x28] sm:$0xf0]  ;;  %v790_v11 = vld [vmem:[%s254_s10 + $0x10] sm:$0xf]  ;;  %v847_v12 = vld [vmem:[%s254_s10 + $0x14] sm:$0xf0] }
  0x21   : > { %v803_v13 = vor.u32 %v848_v8, %v800_v10  ;;  %v846_v14 = vld [vmem:[%s254_s10 + $0x14] sm:$0xf]  ;;  %v792_v15 = vld [vmem:[%s254_s10 + $0x18] sm:$0xf0]  ;;  %v791_v16 = vor.u32 %v847_v12, %v790_v11  ;;  %v782_v18 = vld [vmem:[%s254_s10] sm:$0xf] }
  0x22   : > { %368 = vmatpush.bf16.msra.mxu0 %v799_v9  ;;  %v795_v17 = vor.u32 %v846_v14, %v792_v15  ;;  %v845_v19 = vld [vmem:[%s254_s10 + $0x4] sm:$0xf0]  ;;  %v844_v20 = vld [vmem:[%s254_s10 + $0x4] sm:$0xf]  ;;  %v784_v21 = vld [vmem:[%s254_s10 + $0x8] sm:$0xf0] }
  0x23   : > { %392 = vmatpush.bf16.msra.mxu1 %v803_v13  ;;  %v783_v22 = vor.u32 %v845_v19, %v782_v18  ;;  %v787_v23 = vor.u32 %v844_v20, %v784_v21  ;;  %v841_v24 = vld [vmem:[%s1109_s1] sm:$0xff]  ;;  %vm353_vm0 = vcmask 392192   ;;  %v842_v25 = vld [vmem:[%s1109_s1 + $0x8] sm:$0xff]  ;;  %v843_v26 = vld [vmem:[%s1109_s1 + $0x10] sm:$0xff]  ;;  %s1118_s21 = smov (!%p285_p8, %s757_s21), 1  ;;  %vm659_vm9 = vcmask 1043456  }
  0x24   : > { %s839_s17 = sshll.u32 %s1118_s21, 6  ;;  %v850_v57 = vld [vmem:[%s1110_s2] sm:$0xff]  ;;  %v851_v58 = vld [vmem:[%s1110_s2 + $0x8] sm:$0xff]  ;;  %v852_v59 = vld [vmem:[%s1110_s2 + $0x10] sm:$0xff]  ;;  %s840_s8 = sshll.u32 %s1118_s21, 3 }
  0x25   : > { %s289_s24 = scalar_lea.vmem %s1112_s4, %s839_s17  ;;  %v853_v60 = vld [vmem:[%s1110_s2 + $0x18] sm:$0xff]  ;;  %v439_v61 = vld [vmem:[%s1110_s2 + $0x20] sm:$0xf]  ;;  %v551_v5 = vld [vmem:[%s1111_s3 + $0x8] sm:$0xff]  ;;  %s294_s11 = scalar_lea.vmem %s1113_s5, %s840_s8 }
  0x26   : > { %369 = vmatpush.bf16.msra.mxu0 %v791_v16  ;;  %v463_v62 = vunpack.c.l.b16 %v439_v61  ;;  %v550_v0 = vld [vmem:[%s1111_s3] sm:$0xff]  ;;  %v565_v7 = vld [vmem:[%s1111_s3 + $0x10] sm:$0xff]  ;;  %v579_v13 = vld [vmem:[%s1111_s3 + $0x28] sm:$0xff] }
  0x27   : > { %393 = vmatpush.bf16.msra.mxu1 %v795_v17  ;;  %v578_v4 = vld [vmem:[%s1111_s3 + $0x20] sm:$0xff]  ;;  %v566_v15 = vld [vmem:[%s1111_s3 + $0x18] sm:$0xff]  ;;  %v591_v17 = vld [vmem:[%s1111_s3 + $0x30] sm:$0xff] }
  0x28   : > { %v468_v63 = vpack.c.b16 %v463_v62, %v463_v62 }
  0x2a   : > { %370 = vmatpush.bf16.msra.mxu0 %v783_v22  ;;  %v592_v22 = vld [vmem:[%s1111_s3 + $0x38] sm:$0xff] }
  0x2b   : > { %394 = vmatpush.bf16.msra.mxu1 %v787_v23 }
  0x2d   : > { %804 = vmatmul.msk.bf16.vlgmr.msra.gmra.mxu0 %vm353_vm0, %v841_v24 }
  0x2e   : > { %807 = vmatmul.msk.bf16.vlgmr.msra.gmra.mxu1 %vm353_vm0, %v841_v24 }
  0x3d   : > { %805 = vmatmul.msk.bf16.gmra.mxu0 %vm353_vm0, %v842_v25 }
  0x3e   : > { %808 = vmatmul.msk.bf16.gmra.mxu1 %vm353_vm0, %v842_v25 }
  0x4d   : > { %806 = vmatmul.msk.bf16.gmra.mxu0 %vm353_vm0, %v843_v26 }
  0x4e   : > { %809 = vmatmul.msk.bf16.gmra.mxu1 %vm353_vm0, %v843_v26  ;;  %v604_v26 = vld [vmem:[%s1111_s3 + $0x50] sm:$0xff] }
  0xaa   : > { %v372_v27 = vpop.f32.mrf.mxu0 }
  0xab   : > { %v411_v28 = vmax.f32 %v372_v27, 0.0  ;;  %v396_v29 = vpop.f32.mrf.mxu1  ;;  %v605_v27 = vld [vmem:[%s1111_s3 + $0x58] sm:$0xff] }
  0xac   : > { %v412_v30 = vmax.f32 %v396_v29, 0.0 }
  0xad   : > { %423 = vst [vmem:[%s289_s24] sm:$0xff] %v411_v28 }
  0xae   : > { %424 = vst [vmem:[%s289_s24 + $0x8] sm:$0xff] %v412_v30 }
  0xb2   : > { %v374_v31 = vpop.f32.mrf.mxu0 }
  0xb3   : > { %v413_v32 = vmax.f32 %v374_v31, 0.0  ;;  %v398_v33 = vpop.f32.mrf.mxu1 }
  0xb4   : > { %v414_v34 = vmax.f32 %v398_v33, 0.0  ;;  %v618_v33 = vld [vmem:[%s1111_s3 + $0x68] sm:$0xff] }
  0xb5   : > { %425 = vst [vmem:[%s289_s24 + $0x10] sm:$0xff] %v413_v32  ;;  %v440_v55 = vpack.c.bf16 %v413_v32, %v411_v28  ;;  %v617_v32 = vld [vmem:[%s1111_s3 + $0x60] sm:$0xff] }
  0xb6   : > { %426 = vst [vmem:[%s289_s24 + $0x18] sm:$0xff] %v414_v34  ;;  %v441_v56 = vpack.c.bf16 %v414_v34, %v412_v30 }
  0xba   : > { %v377_v35 = vpop.f32.mrf.mxu0 }
  0xbb   : > { %v415_v36 = vmax.f32 %v377_v35, 0.0  ;;  %v401_v37 = vpop.f32.mrf.mxu1 }
  0xbc   : > { %v416_v38 = vmax.f32 %v401_v37, 0.0 }
  0xbd   : > { %427 = vst [vmem:[%s289_s24 + $0x20] sm:$0xff] %v415_v36 }
  0xbe   : > { %428 = vst [vmem:[%s289_s24 + $0x28] sm:$0xff] %v416_v38 }
  0xc2   : > { %v379_v39 = vpop.f32.mrf.mxu0 }
  0xc3   : > { %v417_v40 = vmax.f32 %v379_v39, 0.0  ;;  %v403_v41 = vpop.f32.mrf.mxu1  ;;  %v631_v39 = vld [vmem:[%s1111_s3 + $0x78] sm:$0xff] }
  0xc4   : > { %v418_v42 = vmax.f32 %v403_v41, 0.0 }
  0xc5   : > { %429 = vst [vmem:[%s289_s24 + $0x30] sm:$0xff] %v417_v40  ;;  %v442_v53 = vpack.c.bf16 %v417_v40, %v415_v36 }
  0xc6   : > { %430 = vst [vmem:[%s289_s24 + $0x38] sm:$0xff] %v418_v42  ;;  %v443_v54 = vpack.c.bf16 %v418_v42, %v416_v38  ;;  %s920_s24 = smov 16   ;;  %v630_v38 = vld [vmem:[%s1111_s3 + $0x70] sm:$0xff] }
  0xca   : > { %v382_v43 = vpop.f32.mrf.mxu0 }
  0xcb   : > { %v406_v44 = vpop.f32.mrf.mxu1  ;;  %v419_v46 = vmax.f32 %v382_v43, 0.0 }
  0xcc   : > { %v420_v49 = vmax.f32 %v406_v44, 0.0  ;;  %v643_v44 = vld [vmem:[%s1111_s3 + $0x80] sm:$0xff] }
  0xd2   : > { %v384_v45 = vpop.f32.mrf.mxu0 }
  0xd3   : > { %v421_v47 = vmax.f32 %v384_v45, 0.0  ;;  %v408_v48 = vpop.f32.mrf.mxu1  ;;  %v644_v45 = vld [vmem:[%s1111_s3 + $0x88] sm:$0xff] }
  0xd4   : > { %v422_v50 = vmax.f32 %v408_v48, 0.0 }
  0xd5   : > { %v444_v51 = vpack.c.bf16 %v421_v47, %v419_v46 }
  0xd6   : > { %v445_v52 = vpack.c.bf16 %v422_v50, %v420_v49 }
  0xd7   : > { %489 = vmatpush.bf16.msrb.mxu0 %v444_v51  ;;  %854 = vmatpush.bf16.msra.mxu2 %v444_v51 }
  0xd8   : > { %522 = vmatpush.bf16.msrb.mxu1 %v445_v52  ;;  %857 = vmatpush.bf16.msra.mxu3 %v445_v52 }
  0xdb   : > { %490 = vmatpush.bf16.msrb.mxu0 %v442_v53  ;;  %855 = vmatpush.bf16.msra.mxu2 %v442_v53 }
  0xdc   : > { %523 = vmatpush.bf16.msrb.mxu1 %v443_v54  ;;  %858 = vmatpush.bf16.msra.mxu3 %v443_v54 }
  0xdf   : > { %491 = vmatpush.bf16.msrb.mxu0 %v440_v55  ;;  %856 = vmatpush.bf16.msra.mxu2 %v440_v55 }
  0xe0   : > { %524 = vmatpush.bf16.msrb.mxu1 %v441_v56  ;;  %859 = vmatpush.bf16.msra.mxu3 %v441_v56 }
  0xe2   : > { %826 = vmatmul.msk.bf16.vlgmr.msrb.gmra.mxu0 %vm353_vm0, %v850_v57  ;;  %827 = vmatmul.msk.bf16.vlgmr.msra.gmra.mxu2 %vm353_vm0, %v851_v58 }
  0xe3   : > { %832 = vmatmul.msk.bf16.vlgmr.msra.gmra.mxu3 %vm353_vm0, %v851_v58  ;;  %831 = vmatmul.msk.bf16.vlgmr.msrb.gmra.mxu1 %vm353_vm0, %v850_v57  ;;  %v558_v58 = vlaneseq }
  0xe5   : > { %v559_v61 = vand.u32 127, %v558_v58 }
  0xe7   : > { %vm560_vm1 = vcmp.lt.s32.totalorder %v559_v61, 17  ;;  %vm573_vm2 = vcmp.lt.s32.totalorder %v559_v61, 16  ;;  %vm586_vm3 = vcmp.lt.s32.totalorder %v559_v61, 15  ;;  %vm599_vm4 = vcmp.lt.s32.totalorder %v559_v61, 1 }
  0xe8   : > { %vm612_vm5 = vcmp.lt.s32.totalorder %v559_v61, 127  ;;  %vm625_vm6 = vcmp.lt.s32.totalorder %v559_v61, 113  ;;  %vm638_vm7 = vcmp.lt.s32.totalorder %v559_v61, 112  ;;  %vm651_vm8 = vcmp.lt.s32.totalorder %v559_v61, 111 }
  0xf2   : > { %828 = vmatmul.msk.bf16.gmra.mxu2 %vm353_vm0, %v852_v59 }
  0xf3   : > { %833 = vmatmul.msk.bf16.gmra.mxu3 %vm353_vm0, %v852_v59 }
 0x102   : > { %829 = vmatmul.msk.bf16.gmra.mxu2 %vm353_vm0, %v853_v60 }
 0x103   : > { %834 = vmatmul.msk.bf16.gmra.mxu3 %vm353_vm0, %v853_v60 }
 0x112   : > { %830 = vmatmul.msk.bf16.gmra.mxu2 %vm353_vm0, %v468_v63 }
 0x113   : > { %835 = vmatmul.msk.bf16.gmra.mxu3 %vm353_vm0, %v468_v63 }
 0x15f   : > { %v493_v1 = vpop.f32.mrf.mxu0 }
 0x160   : > { %v552_v2 = vmul.f32 %v550_v0, %v493_v1  ;;  %v526_v3 = vpop.f32.mrf.mxu1 }
 0x161   : > { %v553_v10 = vmul.f32 %v551_v5, %v526_v3 }
 0x162   : > { %554 = vrot.lane.b32.xlu0 %v552_v2, %s918_s12 }
 0x165   : > { %v498_v6 = vpop.f32.mrf.mxu2 }
 0x166   : > { %v580_v8 = vmul.f32 %v578_v4, %v498_v6  ;;  %v531_v9 = vpop.f32.mrf.mxu3 }
 0x167   : > { %v495_v11 = vpop.f32.mrf.mxu0  ;;  %v581_v18 = vmul.f32 %v579_v13, %v531_v9 }
 0x168   : > { %v567_v12 = vmul.f32 %v565_v7, %v495_v11  ;;  %582 = vrot.lane.b32.xlu2 %v580_v8, %s919_s23  ;;  %v528_v14 = vpop.f32.mrf.mxu1 }
 0x169   : > { %v568_v20 = vmul.f32 %v566_v15, %v528_v14 }
 0x16a   : > { %569 = vrot.lane.b32.xlu1 %v567_v12, %s920_s24  ;;  %556 = vrot.lane.b32.xlu0 %v553_v10, %s918_s12 }
 0x16d   : > { %v500_v16 = vpop.f32.mrf.mxu2 }
 0x16e   : > { %v533_v19 = vpop.f32.mrf.mxu3  ;;  %v593_v21 = vmul.f32 %v591_v17, %v500_v16 }
 0x16f   : > { %v594_v25 = vmul.f32 %v592_v22, %v533_v19 }
 0x170   : > { %584 = vrot.lane.b32.xlu2 %v581_v18, %s919_s23 }
 0x172   : > { %571 = vrot.lane.b32.xlu1 %v568_v20, %s920_s24  ;;  %595 = vrot.lane.b32.xlu0 %v593_v21, %s921_s6 }
 0x175   : > { %v1067_v23 = vpop.f32.mrf.mxu2 }
 0x176   : > { %v536_v24 = vpop.f32.mrf.mxu3 }
 0x17a   : > { %597 = vrot.lane.b32.xlu1 %v594_v25, %s921_s6 }
 0x17d   : > { %v505_v28 = vpop.f32.mrf.mxu2 }
 0x17e   : > { %v606_v29 = vmul.f32 %v604_v26, %v505_v28  ;;  %v538_v30 = vpop.f32.mrf.mxu3 }
 0x17f   : > { %v607_v31 = vmul.f32 %v605_v27, %v538_v30 }
 0x180   : > { %608 = vrot.lane.b32.xlu2 %v606_v29, %s922_s13 }
 0x181   : > { %610 = vrot.lane.b32.xlu0 %v607_v31, %s922_s13 }
 0x185   : > { %v508_v34 = vpop.f32.mrf.mxu2 }
 0x186   : > { %v619_v35 = vmul.f32 %v617_v32, %v508_v34  ;;  %v541_v36 = vpop.f32.mrf.mxu3 }
 0x187   : > { %v620_v37 = vmul.f32 %v618_v33, %v541_v36 }
 0x188   : > { %621 = vrot.lane.b32.xlu1 %v619_v35, %s923_s18 }
 0x189   : > { %623 = vrot.lane.b32.xlu2 %v620_v37, %s923_s18 }
 0x18d   : > { %v510_v40 = vpop.f32.mrf.mxu2 }
 0x18e   : > { %v632_v41 = vmul.f32 %v630_v38, %v510_v40  ;;  %v543_v42 = vpop.f32.mrf.mxu3 }
 0x18f   : > { %v633_v43 = vmul.f32 %v631_v39, %v543_v42 }
 0x190   : > { %634 = vrot.lane.b32.xlu0 %v632_v41, %s924_s27 }
 0x191   : > { %636 = vrot.lane.b32.xlu1 %v633_v43, %s924_s27 }
 0x195   : > { %v513_v46 = vpop.f32.mrf.mxu2 }
 0x196   : > { %v546_v47 = vpop.f32.mrf.mxu3  ;;  %v645_v48 = vmul.f32 %v643_v44, %v513_v46 }
 0x197   : > { %v646_v49 = vmul.f32 %v644_v45, %v546_v47 }
 0x198   : > { %647 = vrot.lane.b32.xlu2 %v645_v48, %s925_s7 }
 0x199   : > { %649 = vrot.lane.b32.xlu0 %v646_v49, %s925_s7 }
 0x19d   : > { %v515_v50 = vpop.f32.mrf.mxu2 }
 0x19e   : > { %v548_v51 = vpop.f32.mrf.mxu3 }
 0x1c2   : > { %v583_v54 = vpop.permute.xlu2 %582 }
 0x1ca   : > { %v585_v57 = vpop.permute.xlu2 %584 }
 0x1cb   : > { %v587_v10 = vsel %vm586_vm3, %v583_v54, %v585_v57  ;;  %v588_v14 = vsel %vm586_vm3, %v585_v57, %v583_v54 }
 0x1d4   : > { %v555_v52 = vpop.permute.xlu0 %554 }
 0x1da   : > { %v609_v62 = vpop.permute.xlu2 %608 }
 0x1dc   : > { %v570_v53 = vpop.permute.xlu1 %569  ;;  %v557_v55 = vpop.permute.xlu0 %556 }
 0x1dd   : > { %v561_v63 = vsel %vm560_vm1, %v555_v52, %v557_v55  ;;  %v562_v2 = vsel %vm560_vm1, %v557_v55, %v555_v52 }
 0x1de   : > { %v564_v4 = vadd.f32 %v561_v63, %v536_v24  ;;  %v563_v6 = vadd.f32 %v562_v2, %v1067_v23 }
 0x1e3   : > { %v624_v9 = vpop.permute.xlu2 %623 }
 0x1e4   : > { %v572_v56 = vpop.permute.xlu1 %571  ;;  %v596_v59 = vpop.permute.xlu0 %595 }
 0x1e5   : > { %v574_v3 = vsel %vm573_vm2, %v570_v53, %v572_v56  ;;  %v575_v5 = vsel %vm573_vm2, %v572_v56, %v570_v53 }
 0x1e6   : > { %v577_v7 = vadd.f32 %v574_v3, %v564_v4  ;;  %v576_v8 = vadd.f32 %v575_v5, %v563_v6 }
 0x1e8   : > { %v590_v13 = vadd.f32 %v587_v10, %v577_v7  ;;  %v589_v17 = vadd.f32 %v588_v14, %v576_v8 }
 0x1ec   : > { %v598_v60 = vpop.permute.xlu1 %597 }
 0x1ed   : > { %v600_v11 = vsel %vm599_vm4, %v596_v59, %v598_v60  ;;  %v601_v15 = vsel %vm599_vm4, %v598_v60, %v596_v59 }
 0x1ee   : > { %v603_v18 = vadd.f32 %v600_v11, %v590_v13  ;;  %v602_v22 = vadd.f32 %v601_v15, %v589_v17 }
 0x1f2   : > { %v648_v28 = vpop.permute.xlu2 %647 }
 0x1f3   : > { %v611_v0 = vpop.permute.xlu0 %610 }
 0x1f4   : > { %v614_v16 = vsel %vm612_vm5, %v611_v0, %v609_v62  ;;  %v613_v20 = vsel %vm612_vm5, %v609_v62, %v611_v0 }
 0x1f5   : > { %v616_v23 = vadd.f32 %v614_v16, %v603_v18  ;;  %v615_v26 = vadd.f32 %v613_v20, %v602_v22 }
 0x1fa   : > { %v622_v1 = vpop.permute.xlu1 %621 }
 0x1fb   : > { %v627_v21 = vsel %vm625_vm6, %v624_v9, %v622_v1  ;;  %v626_v24 = vsel %vm625_vm6, %v622_v1, %v624_v9 }
 0x1fc   : > { %v629_v27 = vadd.f32 %v627_v21, %v616_v23  ;;  %v628_v30 = vadd.f32 %v626_v24, %v615_v26 }
 0x202   : > { %v635_v12 = vpop.permute.xlu0 %634 }
 0x203   : > { %v637_v19 = vpop.permute.xlu1 %636 }
 0x204   : > { %v640_v25 = vsel %vm638_vm7, %v637_v19, %v635_v12  ;;  %v639_v29 = vsel %vm638_vm7, %v635_v12, %v637_v19 }
 0x205   : > { %v642_v31 = vadd.f32 %v640_v25, %v629_v27  ;;  %v641_v35 = vadd.f32 %v639_v29, %v628_v30 }
 0x20b   : > { %v650_v32 = vpop.permute.xlu0 %649 }
 0x20c   : > { %v652_v33 = vsel %vm651_vm8, %v648_v28, %v650_v32  ;;  %v653_v34 = vsel %vm651_vm8, %v650_v32, %v648_v28 }
 0x20d   : > { %v655_v36 = vadd.f32 %v653_v34, %v642_v31  ;;  %v654_v37 = vadd.f32 %v652_v33, %v641_v35 }
 0x20f   : > { %v658_v38 = vrot.slane %v655_v36, 4 }
 0x211   : > { %v660_v39 = vsel %vm659_vm9, %v654_v37, %v658_v38 }
 0x212   : > { %662 = vst [vmem:[%s294_s11] sm:$0xff] %v660_v39 }
 0x213 PF: > { %p13_p9 = scmp.ge.s32.totalorder %s973_s22, 4   ;;  %s1114_s18 = smov %s912_s19 }
 0x214   : > { %s1115_s19 = smov %s982_s25  ;;  %s1116_s20 = smov %s973_s22 }
 0x215   :  { %15 = sbr.rel (!%p13_p9) target bundleno = 2 (0x2), region = 121 }

</bundles_post_ra>
